<compile_context>
chip_gen: v7x
topology: tpu7x:2x2x1
jax: 0.10.0
libtpu: 0.0.40
codegen_flags: <defaults>
</compile_context>

<pallas_src>
import jax
import jax.numpy as jnp
import numpy as np
from jax.experimental import pallas as pl
from jax.experimental.pallas import tpu as pltpu


def attention_kernel(x_ref, w_ref, o_ref):
    # x_ref: (TB, C, N, H) f32   native-layout input tile (N on sublanes, H on lanes)
    # w_ref: (1, 1, 1, H)  f32   "x" half of the linear weight
    # o_ref: (TB, 1, 1, H) f32   mean-over-C of the weighted sum over N
    x = x_ref[...]
    w = w_ref[...]

    # Per-(b, c, n) attention score: dot over H (lane reduce, keepdims -> no relayout).
    s = jnp.sum(x * w, axis=-1, keepdims=True)                 # (TB, C, N, 1)

    # Softmax over the node axis N (sublanes).  Current-node term and bias are
    # constant along N and cancel (shift invariance), so they are omitted.
    m = jnp.max(s, axis=2, keepdims=True)                      # (TB, C, 1, 1)
    e = jnp.exp(s - m)
    denom = jnp.sum(e, axis=2, keepdims=True)
    weights = e * pl.reciprocal(denom, approx=True)            # EUP vrcp (free slot)

    # Weighted sum over N (sublane reduce), then mean over C (major-dim adds).
    x2 = jnp.sum(x * weights, axis=2, keepdims=True)           # (TB, C, 1, H)
    x3 = jnp.mean(x2, axis=1, keepdims=True)                   # (TB, 1, 1, H)
    o_ref[...] = x3.astype(o_ref.dtype)


def _round_up(v, m):
    return -(-v // m) * m


def _pick_batch_block(B, per_batch_vmem_bytes, *, target_bytes=2 << 20, min_steps=4):
    """Batch rows per grid step.

    Targets ~2 MiB of (tile-padded) VMEM per input block to amortize the
    ~0.35 us per-step pipeline overhead, but keeps >= min_steps grid steps
    whenever the batch allows it so dual-TC chips (v7x) get >=2 double-
    buffered steps per core.  No divisibility requirement on B (cdiv grid).
    """
    cap = max(1, target_bytes // max(per_batch_vmem_bytes, 1))
    if B >= min_steps:
        cap = min(cap, -(-B // min_steps))
    return max(1, min(cap, B))


def attention_forward(x, w, b):
    """x: (B, C, N, H) f32; w: (1, 2H) f32; b: (1,) f32  ->  (B, H) f32.

    Matches nn.Linear(2H, 1) + softmax(dim=2) + weighted sum over N + mean
    over C.  The current-node half of the weight (w[:, :H]) and the bias are
    constant along the softmax axis, so they cancel and are not sent to the
    kernel.
    """
    B, C, N, H = x.shape
    del b  # shift-invariant under softmax

    # Only the "x" half of the linear weight matters; tiny (H,) vector.
    w_x = w[:, H:].reshape(1, 1, 1, H).astype(x.dtype)

    # VMEM footprint of one batch row of x: minor dims pad to (8, 128) f32 tiles.
    per_batch_vmem = C * _round_up(N, 8) * _round_up(H, 128) * x.dtype.itemsize
    TB = _pick_batch_block(B, per_batch_vmem)
    grid = (pl.cdiv(B, TB),)

    # Double-buffered input tiles + headroom; clamp under v7x's 64 MiB physical VMEM.
    tile_bytes = TB * per_batch_vmem
    vmem_limit = min(max(32 << 20, 2 * tile_bytes + (4 << 20)), 48 << 20)

    out = pl.pallas_call(
        attention_kernel,
        out_shape=jax.ShapeDtypeStruct((B, 1, 1, H), x.dtype),
        grid=grid,
        in_specs=[
            pl.BlockSpec((TB, C, N, H), lambda i: (i, 0, 0, 0)),  # x, native layout
            pl.BlockSpec((1, 1, 1, H), lambda i: (0, 0, 0, 0)),   # w_x (resident)
        ],
        out_specs=pl.BlockSpec((TB, 1, 1, H), lambda i: (i, 0, 0, 0)),
        compiler_params=pltpu.CompilerParams(
            dimension_semantics=("parallel",),
            vmem_limit_bytes=vmem_limit),
    )(x, w_x)

    return out[:, 0, 0, :]


def attention_reference(x, w, b):
    """Pure-JAX replica of the PyTorch forward (full math incl. curr/bias)."""
    B, C, N, H = x.shape
    curr = jnp.broadcast_to(x[:, :, 0:1, :], x.shape)          # expand_as
    stacked = jnp.concatenate([curr, x], axis=3)               # (B, C, N, 2H)
    x1 = jnp.einsum("bcnk,ok->bcno", stacked, w) + b           # (B, C, N, 1)
    x1 = jnp.squeeze(x1, axis=-1)                              # (B, C, N)
    weights = jax.nn.softmax(x1, axis=2)[..., None]            # (B, C, N, 1)
    x2 = jnp.sum(x * weights, axis=2)                          # (B, C, H)
    return jnp.mean(x2, axis=1)                                # (B, H)


if __name__ == "__main__":
    B, C, N, H = 2, 4, 8, 32          # n_h = 32

    key = jax.random.PRNGKey(0)
    kx, kw, kb = jax.random.split(key, 3)
    x = jax.random.normal(kx, (B, C, N, H), dtype=jnp.float32)
    # nn.Linear(n_h*2, 1): weight (1, 2H), bias (1,) — deterministic synthetic init
    w = jax.random.normal(kw, (1, 2 * H), dtype=jnp.float32) * 0.1
    b = jax.random.normal(kb, (1,), dtype=jnp.float32) * 0.1

    out = jax.block_until_ready(attention_forward(x, w, b))
    ref = attention_reference(x, w, b)

    # Tolerance loosened slightly for the EUP approximate reciprocal in the
    # softmax denominator; error is a tiny per-row scale only.
    np.testing.assert_allclose(np.asarray(out), np.asarray(ref), rtol=5e-3, atol=5e-3)

    print("KERNEL_OK")
</pallas_src>

<mosaic_0001>
module attributes {stable_mosaic.version = 11 : i64} {
  func.func @attention_kernel(%arg0: i32, %arg1: memref<2x4x8x32xf32, #tpu.memory_space<vmem>>, %arg2: memref<1x1x1x32xf32, #tpu.memory_space<vmem>>, %arg3: memref<2x1x1x32xf32, #tpu.memory_space<vmem>>) attributes {dimension_semantics = [#tpu.dimension_semantics<parallel>], iteration_bounds = array<i64: 1>, scalar_prefetch = 0 : i64, scratch_operands = 0 : i64, tpu.core_type = #tpu.core_type<tc>, window_params = [{transform_indices = @transform_0, window_bounds = array<i64: 2, 4, 8, 32>}, {pipeline_mode = #tpu.pipeline_mode<synchronous>, transform_indices = @transform_1, window_bounds = array<i64: 1, 1, 1, 32>}, {transform_indices = @transform_2, window_bounds = array<i64: 2, 1, 1, 32>}]} {
    %c0 = arith.constant 0 : index
    %c0_0 = arith.constant 0 : index
    %c0_1 = arith.constant 0 : index
    %c0_2 = arith.constant 0 : index
    %0 = vector.load %arg1[%c0, %c0_0, %c0_1, %c0_2] : memref<2x4x8x32xf32, #tpu.memory_space<vmem>>, vector<2x4x8x32xf32>
    %c0_3 = arith.constant 0 : index
    %c0_4 = arith.constant 0 : index
    %c0_5 = arith.constant 0 : index
    %c0_6 = arith.constant 0 : index
    %1 = vector.load %arg2[%c0_3, %c0_4, %c0_5, %c0_6] : memref<1x1x1x32xf32, #tpu.memory_space<vmem>>, vector<1x1x1x32xf32>
    %2 = vector.broadcast %1 : vector<1x1x1x32xf32> to vector<2x4x8x32xf32>
    %3 = arith.mulf %0, %2 : vector<2x4x8x32xf32>
    %cst = arith.constant dense<0.000000e+00> : vector<2x4x8xf32>
    %4 = vector.multi_reduction <add>, %3, %cst [3] : vector<2x4x8x32xf32> to vector<2x4x8xf32>
    %5 = vector.shape_cast %4 : vector<2x4x8xf32> to vector<2x4x8x1xf32>
    %cst_7 = arith.constant dense<0xFF800000> : vector<2x4x1xf32>
    %6 = vector.multi_reduction <maximumf>, %5, %cst_7 [2] : vector<2x4x8x1xf32> to vector<2x4x1xf32>
    %7 = vector.shape_cast %6 : vector<2x4x1xf32> to vector<2x4x1x1xf32>
    %8 = vector.broadcast %7 : vector<2x4x1x1xf32> to vector<2x4x8x1xf32>
    %9 = arith.subf %5, %8 : vector<2x4x8x1xf32>
    %10 = math.exp %9 : vector<2x4x8x1xf32>
    %cst_8 = arith.constant dense<0.000000e+00> : vector<2x4x1xf32>
    %11 = vector.multi_reduction <add>, %10, %cst_8 [2] : vector<2x4x8x1xf32> to vector<2x4x1xf32>
    %12 = vector.shape_cast %11 : vector<2x4x1xf32> to vector<2x4x1x1xf32>
    %13 = tpu.reciprocal %12 {approx = true} : vector<2x4x1x1xf32> -> vector<2x4x1x1xf32>
    %14 = vector.broadcast %13 : vector<2x4x1x1xf32> to vector<2x4x8x1xf32>
    %15 = arith.mulf %10, %14 : vector<2x4x8x1xf32>
    %16 = vector.broadcast %15 : vector<2x4x8x1xf32> to vector<2x4x8x32xf32>
    %17 = arith.mulf %0, %16 : vector<2x4x8x32xf32>
    %cst_9 = arith.constant dense<0.000000e+00> : vector<2x4x32xf32>
    %18 = vector.multi_reduction <add>, %17, %cst_9 [2] : vector<2x4x8x32xf32> to vector<2x4x32xf32>
    %19 = vector.shape_cast %18 : vector<2x4x32xf32> to vector<2x4x1x32xf32>
    %cst_10 = arith.constant dense<0.000000e+00> : vector<2x1x32xf32>
    %20 = vector.multi_reduction <add>, %19, %cst_10 [1] : vector<2x4x1x32xf32> to vector<2x1x32xf32>
    %21 = vector.shape_cast %20 : vector<2x1x32xf32> to vector<2x1x1x32xf32>
    %cst_11 = arith.constant 4.000000e+00 : f32
    %22 = vector.broadcast %cst_11 : f32 to vector<2x1x1x32xf32>
    %23 = arith.divf %21, %22 : vector<2x1x1x32xf32>
    %c0_12 = arith.constant 0 : index
    %c0_13 = arith.constant 0 : index
    %c0_14 = arith.constant 0 : index
    %c0_15 = arith.constant 0 : index
    %24 = vector.load %arg3[%c0_12, %c0_13, %c0_14, %c0_15] : memref<2x1x1x32xf32, #tpu.memory_space<vmem>>, vector<2x1x1x32xf32>
    tpu.vector_store %arg3[%c0_12, %c0_13, %c0_14, %c0_15], %23 {strides = array<i32>} : memref<2x1x1x32xf32, #tpu.memory_space<vmem>>, vector<2x1x1x32xf32>,
    return
  }
  func.func @transform_0(%arg0: i32) -> (i32, i32, i32, i32) {
    %c0_i32 = arith.constant 0 : i32
    %c0_i32_0 = arith.constant 0 : i32
    %c0_i32_1 = arith.constant 0 : i32
    %c0_i32_2 = arith.constant 0 : i32
    return %arg0, %c0_i32, %c0_i32_0, %c0_i32_1 : i32, i32, i32, i32
  }
  func.func @transform_1(%arg0: i32) -> (i32, i32, i32, i32) {
    %c0_i32 = arith.constant 0 : i32
    %c0_i32_0 = arith.constant 0 : i32
    %c0_i32_1 = arith.constant 0 : i32
    %c0_i32_2 = arith.constant 0 : i32
    %c0_i32_3 = arith.constant 0 : i32
    return %c0_i32, %c0_i32_0, %c0_i32_1, %c0_i32_2 : i32, i32, i32, i32
  }
  func.func @transform_2(%arg0: i32) -> (i32, i32, i32, i32) {
    %c0_i32 = arith.constant 0 : i32
    %c0_i32_0 = arith.constant 0 : i32
    %c0_i32_1 = arith.constant 0 : i32
    %c0_i32_2 = arith.constant 0 : i32
    return %arg0, %c0_i32, %c0_i32_0, %c0_i32_1 : i32, i32, i32, i32
  }
}

</mosaic_0001>

<bundles_post_ra>
// kernel: tpu_custom_call.1
= control target key start
LH: loop header
LB: loop body
LE: loop exit
PB: predicated region body
PF: predicated region fallthrough
CT: control target
= control target key end

     0   :  { %7 = vsyncpa [#allocation3], 0  ;;  %s542_s0 = inlined_call_operand.hbm [shape: f32[2,4,8,32], index: 0, kind: input, shape index: {}]   ;;  %s543_s1 = inlined_call_operand.vmem [shape: f32[1,1,1,32], index: 1, kind: input, shape index: {}]   ;;  %s544_s2 = inlined_call_operand.hbm [shape: f32[2,1,1,32], index: 2, kind: output, shape index: {}]  }
   0x1   :  { %8 = vsyncpa [#allocation4], 0  ;;  %s398_s9 = smov [#allocation2]   ;;  %s350_s13 = scalar_lea.hbm %s542_s0, 1024 }
   0x2   :  { %s14_s10 = sshll.u32 %s398_s9, 4  ;;  %p351_p0 = scmp.ne.s32.totalorder %s542_s0, %s350_s13  ;;  %s15_s10 = int_to_ptr.vmem [resolvable:$true] %s14_s10 }
   0x3   :  { %p354_p1 = scmp.lt.u32.totalorder %s350_s13, %s542_s0 }
   0x5   :  { %p356_p2 = pnand %p354_p1, %p351_p0 }
   0x7   :  { %359 = shalt.err (!%p356_p2)
}
   0x8   :  { %s360_s18 = scalar_lea.vmem %s15_s10, 1024  ;;  %p365_p4 = scmp.lt.s32.totalorder %s15_s10, %s15_s10 }
   0x9   :  { %p361_p3 = scmp.ne.s32.totalorder %s15_s10, %s360_s18  ;;  %p366_p5 = scmp.lt.s32.totalorder %s360_s18, %s360_s18 }
   0xb   :  { %p367_p6 = por %p366_p5, %p365_p4 }
   0xd   :  { %p368_p7 = pnand %p367_p6, %p361_p3 }
   0xf   :  { %371 = shalt.err (!%p368_p7)
}
  0x10   :  { %s399_s19 = smov 128   ;;  %s400_s20 = smov 8  }
  0x11   :  { %20 = dma.hbm_to_vmem [thread:$0]  %s542_s0, 1024, %s15_s10, [#allocation3], %s399_s19, %s399_s19, %s400_s20  }
  0x12   :  { %394 = dma.done.wait [#allocation3], 1024  }
  0x13   :  { %395 = vsyncadd [#allocation3], 4294966272  ;;  %v431_v0 = vld [vmem:[#allocation2 + $0x20] sm:$0xff]  ;;  %vm49_vm0 = vcmask 261120   ;;  %v440_v5 = vld [vmem:[#allocation2 + $0x28] sm:$0xff]  ;;  %s401_s0 = smov [#allocation5]  }
  0x14   :  { %v311_v1 = vld [vmem:[%s543_s1] ss:$0 sm:$0xff]  ;;  %v442_v6 = vld [vmem:[#allocation2 + $0x8] sm:$0xff]  ;;  %v446_v9 = vld [vmem:[#allocation2 + $0x30] sm:$0xff]  ;;  %s299_s1 = sshll.u32 %s401_s0, 4  ;;  %vm291_vm1 = vcmask 253952   ;;  %s300_s1 = int_to_ptr.vmem [resolvable:$true] %s299_s1 }
  0x15   :  { %v436_v2 = vld [vmem:[#allocation2] sm:$0xff]  ;;  %v45_v3 = vmul.f32 %v311_v1, %v431_v0  ;;  %v46_v7 = vmul.f32 %v311_v1, %v440_v5  ;;  %v42_v8 = vmul.f32 %v311_v1, %v442_v6  ;;  %v448_v10 = vld [vmem:[#allocation2 + $0x10] sm:$0xff]  ;;  %v47_v15 = vmul.f32 %v311_v1, %v446_v9  ;;  %v456_v17 = vld [vmem:[#allocation2 + $0x38] sm:$0xff]  ;;  %s372_s25 = scalar_lea.vmem %s300_s1, 32  ;;  %p377_p9 = scmp.lt.s32.totalorder %s300_s1, %s300_s1 }
  0x16   :  { %v41_v4 = vmul.f32 %v311_v1, %v436_v2  ;;  %v43_v16 = vmul.f32 %v311_v1, %v448_v10  ;;  %v458_v18 = vld [vmem:[#allocation2 + $0x18] sm:$0xff]  ;;  %v48_v21 = vmul.f32 %v311_v1, %v456_v17  ;;  %p373_p8 = scmp.ne.s32.totalorder %s300_s1, %s372_s25  ;;  %p378_p10 = scmp.lt.s32.totalorder %s372_s25, %s372_s25 }
  0x17   :  { %v62_v11 = vsel %vm49_vm0, %v45_v3, 0.0  ;;  %v65_v13 = vsel %vm49_vm0, %v46_v7, 0.0  ;;  %v53_v14 = vsel %vm49_vm0, %v42_v8, 0.0  ;;  %v68_v19 = vsel %vm49_vm0, %v47_v15, 0.0 }
  0x18   :  { %v50_v12 = vsel %vm49_vm0, %v41_v4, 0.0  ;;  %63 = vadd.xlane.f32.xlu1 %v62_v11  ;;  %v56_v20 = vsel %vm49_vm0, %v43_v16, 0.0  ;;  %v44_v22 = vmul.f32 %v311_v1, %v458_v18  ;;  %v71_v23 = vsel %vm49_vm0, %v48_v21, 0.0  ;;  %p379_p11 = por %p378_p10, %p377_p9 }
  0x19   :  { %51 = vadd.xlane.f32.xlu0 %v50_v12 }
  0x1a   :  { %v59_v24 = vsel %vm49_vm0, %v44_v22, 0.0  ;;  %p380_p12 = pnand %p379_p11, %p373_p8 }
  0x1c   :  { %66 = vadd.xlane.f32.xlu1 %v65_v13 }
  0x1d   :  { %54 = vadd.xlane.f32.xlu0 %v53_v14 }
  0x20   :  { %69 = vadd.xlane.f32.xlu1 %v68_v19 }
  0x21   :  { %57 = vadd.xlane.f32.xlu0 %v56_v20 }
  0x24   :  { %72 = vadd.xlane.f32.xlu1 %v71_v23 }
  0x25   :  { %60 = vadd.xlane.f32.xlu0 %v59_v24 }
  0xa5   :  { %v64_v25 = vpop.xlane.xlu1 %63 }
  0xa6   :  { %v52_v26 = vpop.xlane.xlu0 %51  ;;  %v98_v27 = vrot.slane %v64_v25, 4 }
  0xa7   :  { %v74_v28 = vrot.slane %v52_v26, 4 }
  0xa8   :  { %v99_v29 = vmax.f32 %v64_v25, %v98_v27 }
  0xa9   :  { %v75_v30 = vmax.f32 %v52_v26, %v74_v28  ;;  %v67_v31 = vpop.xlane.xlu1 %66 }
  0xaa   :  { %v55_v32 = vpop.xlane.xlu0 %54  ;;  %v100_v33 = vrot.slane %v99_v29, 2  ;;  %v104_v35 = vrot.slane %v67_v31, 4 }
  0xab   :  { %v76_v34 = vrot.slane %v75_v30, 2  ;;  %v80_v36 = vrot.slane %v55_v32, 4 }
  0xac   :  { %v101_v37 = vmax.f32 %v99_v29, %v100_v33  ;;  %v105_v39 = vmax.f32 %v67_v31, %v104_v35 }
  0xad   :  { %v77_v38 = vmax.f32 %v75_v30, %v76_v34  ;;  %v81_v40 = vmax.f32 %v55_v32, %v80_v36  ;;  %v70_v41 = vpop.xlane.xlu1 %69 }
  0xae   :  { %v58_v42 = vpop.xlane.xlu0 %57  ;;  %v102_v43 = vrot.slane %v101_v37, 1  ;;  %v106_v45 = vrot.slane %v105_v39, 2  ;;  %v110_v47 = vrot.slane %v70_v41, 4 }
  0xaf   :  { %v78_v44 = vrot.slane %v77_v38, 1  ;;  %v82_v46 = vrot.slane %v81_v40, 2  ;;  %v86_v48 = vrot.slane %v58_v42, 4 }
  0xb0   :  { %v103_v49 = vmax.f32 %v101_v37, %v102_v43  ;;  %v107_v51 = vmax.f32 %v105_v39, %v106_v45  ;;  %v111_v53 = vmax.f32 %v70_v41, %v110_v47 }
  0xb1   :  { %v79_v50 = vmax.f32 %v77_v38, %v78_v44  ;;  %v83_v52 = vmax.f32 %v81_v40, %v82_v46  ;;  %v87_v54 = vmax.f32 %v58_v42, %v86_v48  ;;  %v73_v55 = vpop.xlane.xlu1 %72 }
  0xb2   :  { %v61_v56 = vpop.xlane.xlu0 %60  ;;  %v126_v57 = vsub.f32 %v64_v25, %v103_v49  ;;  %v108_v59 = vrot.slane %v107_v51, 1  ;;  %v112_v61 = vrot.slane %v111_v53, 2  ;;  %v116_v63 = vrot.slane %v73_v55, 4 }
  0xb3   :  { %v122_v58 = vsub.f32 %v52_v26, %v79_v50  ;;  %v84_v60 = vrot.slane %v83_v52, 1  ;;  %v88_v62 = vrot.slane %v87_v54, 2  ;;  %v92_v1 = vrot.slane %v61_v56, 4 }
  0xb4   :  { %v138_v3 = vmul.f32 1.442695, %v126_v57  ;;  %v109_v7 = vmax.f32 %v107_v51, %v108_v59  ;;  %v113_v11 = vmax.f32 %v111_v53, %v112_v61  ;;  %v117_v13 = vmax.f32 %v73_v55, %v116_v63 }
  0xb5   :  { %v130_v4 = vmul.f32 1.442695, %v122_v58  ;;  %v85_v8 = vmax.f32 %v83_v52, %v84_v60  ;;  %v89_v12 = vmax.f32 %v87_v54, %v88_v62  ;;  %v93_v14 = vmax.f32 %v61_v56, %v92_v1 }
  0xb6   :  { %318 = vpow2.f32 %v138_v3  ;;  %v127_v15 = vsub.f32 %v67_v31, %v109_v7  ;;  %v114_v19 = vrot.slane %v113_v11, 1  ;;  %v118_v21 = vrot.slane %v117_v13, 2 }
  0xb7   :  { %v123_v16 = vsub.f32 %v55_v32, %v85_v8  ;;  %320 = vpow2.f32 %v130_v4  ;;  %v90_v20 = vrot.slane %v89_v12, 1  ;;  %v94_v24 = vrot.slane %v93_v14, 2 }
  0xb8   :  { %v140_v22 = vmul.f32 1.442695, %v127_v15  ;;  %v115_v25 = vmax.f32 %v113_v11, %v114_v19  ;;  %v119_v27 = vmax.f32 %v117_v13, %v118_v21 }
  0xb9   :  { %v132_v23 = vmul.f32 1.442695, %v123_v16  ;;  %v91_v26 = vmax.f32 %v89_v12, %v90_v20  ;;  %v95_v28 = vmax.f32 %v93_v14, %v94_v24 }
  0xba   :  { %322 = vpow2.f32 %v140_v22  ;;  %v128_v29 = vsub.f32 %v70_v41, %v115_v25  ;;  %v120_v33 = vrot.slane %v119_v27, 1 }
  0xbb   :  { %324 = vpow2.f32 %v132_v23  ;;  %v124_v30 = vsub.f32 %v58_v42, %v91_v26  ;;  %v96_v34 = vrot.slane %v95_v28, 1 }
  0xbc   :  { %v142_v35 = vmul.f32 1.442695, %v128_v29  ;;  %v121_v32 = vmax.f32 %v119_v27, %v120_v33 }
  0xbd   :  { %v134_v31 = vmul.f32 1.442695, %v124_v30  ;;  %v97_v36 = vmax.f32 %v95_v28, %v96_v34 }
  0xbe   :  { %326 = vpow2.f32 %v142_v35  ;;  %v129_v37 = vsub.f32 %v73_v55, %v121_v32 }
  0xbf   :  { %328 = vpow2.f32 %v134_v31  ;;  %v125_v39 = vsub.f32 %v61_v56, %v97_v36 }
  0xc0   :  { %v466_v38 = vpop.eup %318  ;;  %v144_v44 = vmul.f32 1.442695, %v129_v37 }
  0xc1   :  { %v468_v40 = vpop.eup %320  ;;  %v170_v43 = vrot.slane %v466_v38, 4  ;;  %v136_v42 = vmul.f32 1.442695, %v125_v39 }
  0xc2   :  { %v146_v41 = vrot.slane %v468_v40, 4  ;;  %330 = vpow2.f32 %v144_v44 }
  0xc3   :  { %v171_v45 = vadd.f32 %v466_v38, %v170_v43  ;;  %332 = vpow2.f32 %v136_v42 }
  0xc4   :  { %v473_v46 = vpop.eup %322  ;;  %v147_v47 = vadd.f32 %v468_v40, %v146_v41 }
  0xc5   :  { %v476_v48 = vpop.eup %324  ;;  %v172_v49 = vrot.slane %v171_v45, 2  ;;  %v176_v50 = vrot.slane %v473_v46, 4 }
  0xc6   :  { %v148_v51 = vrot.slane %v147_v47, 2  ;;  %v152_v52 = vrot.slane %v476_v48, 4 }
  0xc7   :  { %v173_v53 = vadd.f32 %v172_v49, %v171_v45  ;;  %v177_v54 = vadd.f32 %v473_v46, %v176_v50 }
  0xc8   :  { %v149_v55 = vadd.f32 %v148_v51, %v147_v47  ;;  %v153_v56 = vadd.f32 %v476_v48, %v152_v52  ;;  %v482_v57 = vpop.eup %326 }
  0xc9   :  { %v174_v58 = vrot.slane %v173_v53, 1  ;;  %v178_v59 = vrot.slane %v177_v54, 2  ;;  %v484_v60 = vpop.eup %328  ;;  %v182_v63 = vrot.slane %v482_v57, 4 }
  0xca   :  { %v150_v61 = vrot.slane %v149_v55, 1  ;;  %v154_v62 = vrot.slane %v153_v56, 2  ;;  %v158_v4 = vrot.slane %v484_v60, 4 }
  0xcb   :  { %v175_v1 = vadd.f32 %v174_v58, %v173_v53  ;;  %v179_v3 = vadd.f32 %v178_v59, %v177_v54  ;;  %v183_v11 = vadd.f32 %v482_v57, %v182_v63 }
  0xcc   :  { %v151_v7 = vadd.f32 %v150_v61, %v149_v55  ;;  %v155_v8 = vadd.f32 %v154_v62, %v153_v56  ;;  %v489_v12 = vpop.eup %330  ;;  %v159_v14 = vadd.f32 %v484_v60, %v158_v4 }
  0xcd   :  { %334 = vrcp.f32 %v175_v1  ;;  %v180_v13 = vrot.slane %v179_v3, 1  ;;  %v492_v15 = vpop.eup %332  ;;  %v184_v19 = vrot.slane %v183_v11, 2  ;;  %v188_v20 = vrot.slane %v489_v12, 4 }
  0xce   :  { %336 = vrcp.f32 %v151_v7  ;;  %v156_v16 = vrot.slane %v155_v8, 1  ;;  %v160_v22 = vrot.slane %v159_v14, 2  ;;  %v164_v23 = vrot.slane %v492_v15, 4 }
  0xcf   :  { %v181_v21 = vadd.f32 %v180_v13, %v179_v3  ;;  %v185_v25 = vadd.f32 %v184_v19, %v183_v11  ;;  %v189_v26 = vadd.f32 %v489_v12, %v188_v20 }
  0xd0   :  { %v157_v24 = vadd.f32 %v156_v16, %v155_v8  ;;  %v161_v27 = vadd.f32 %v160_v22, %v159_v14  ;;  %v165_v28 = vadd.f32 %v492_v15, %v164_v23 }
  0xd1   :  { %338 = vrcp.f32 %v181_v21  ;;  %v186_v29 = vrot.slane %v185_v25, 1  ;;  %v190_v30 = vrot.slane %v189_v26, 2 }
  0xd2   :  { %340 = vrcp.f32 %v157_v24  ;;  %v162_v33 = vrot.slane %v161_v27, 1  ;;  %v166_v34 = vrot.slane %v165_v28, 2 }
  0xd3   :  { %v187_v35 = vadd.f32 %v186_v29, %v185_v25  ;;  %v191_v31 = vadd.f32 %v190_v30, %v189_v26 }
  0xd4   :  { %v163_v32 = vadd.f32 %v162_v33, %v161_v27  ;;  %v167_v36 = vadd.f32 %v166_v34, %v165_v28 }
  0xd5   :  { %342 = vrcp.f32 %v187_v35  ;;  %v192_v37 = vrot.slane %v191_v31, 1 }
  0xd6   :  { %344 = vrcp.f32 %v163_v32  ;;  %v168_v43 = vrot.slane %v167_v36, 1 }
  0xd7   :  { %v335_v39 = vpop.eup %334  ;;  %v193_v42 = vadd.f32 %v192_v37, %v191_v31 }
  0xd8   :  { %v337_v44 = vpop.eup %336  ;;  %v206_v41 = vmul.f32 %v335_v39, %v466_v38  ;;  %v169_v47 = vadd.f32 %v168_v43, %v167_v36 }
  0xd9   :  { %v202_v45 = vmul.f32 %v337_v44, %v468_v40  ;;  %346 = vrcp.f32 %v193_v42 }
  0xda   :  { %v214_v49 = vmul.f32 %v206_v41, %v431_v0  ;;  %348 = vrcp.f32 %v169_v47 }
  0xdb   :  { %v339_v50 = vpop.eup %338  ;;  %v210_v51 = vmul.f32 %v202_v45, %v436_v2 }
  0xdc   :  { %v341_v52 = vpop.eup %340  ;;  %v207_v53 = vmul.f32 %v339_v50, %v473_v46  ;;  %v246_v54 = vsel %vm49_vm0, %v214_v49, 0.0 }
  0xdd   :  { %v203_v55 = vmul.f32 %v341_v52, %v476_v48  ;;  %v218_v38 = vsel %vm49_vm0, %v210_v51, 0.0  ;;  %v247_v56 = vrot.slane %v246_v54, 4 }
  0xde   :  { %v215_v40 = vmul.f32 %v207_v53, %v440_v5  ;;  %v219_v58 = vrot.slane %v218_v38, 4 }
  0xdf   :  { %v211_v59 = vmul.f32 %v203_v55, %v442_v6  ;;  %v248_v0 = vadd.f32 %v247_v56, %v246_v54  ;;  %v343_v61 = vpop.eup %342 }
  0xe0   :  { %v220_v62 = vadd.f32 %v219_v58, %v218_v38  ;;  %v253_v2 = vsel %vm49_vm0, %v215_v40, 0.0  ;;  %v345_v63 = vpop.eup %344  ;;  %v208_v46 = vmul.f32 %v343_v61, %v482_v57 }
  0xe1   :  { %v225_v1 = vsel %vm49_vm0, %v211_v59, 0.0  ;;  %v249_v3 = vrot.slane %v248_v0, 2  ;;  %v254_v48 = vrot.slane %v253_v2, 4  ;;  %v204_v4 = vmul.f32 %v345_v63, %v484_v60 }
  0xe2   :  { %v226_v7 = vrot.slane %v225_v1, 4  ;;  %v216_v5 = vmul.f32 %v208_v46, %v446_v9  ;;  %v221_v8 = vrot.slane %v220_v62, 2 }
  0xe3   :  { %v255_v11 = vadd.f32 %v254_v48, %v253_v2  ;;  %v347_v6 = vpop.eup %346  ;;  %v212_v13 = vmul.f32 %v204_v4, %v448_v10  ;;  %v250_v20 = vadd.f32 %v249_v3, %v248_v0 }
  0xe4   :  { %v227_v14 = vadd.f32 %v226_v7, %v225_v1  ;;  %v349_v16 = vpop.eup %348  ;;  %v209_v19 = vmul.f32 %v347_v6, %v489_v12  ;;  %v260_v21 = vsel %vm49_vm0, %v216_v5, 0.0  ;;  %v222_v24 = vadd.f32 %v221_v8, %v220_v62 }
  0xe5   :  { %v256_v57 = vrot.slane %v255_v11, 2  ;;  %v205_v22 = vmul.f32 %v349_v16, %v492_v15  ;;  %v232_v60 = vsel %vm49_vm0, %v212_v13, 0.0  ;;  %v261_v28 = vrot.slane %v260_v21, 4 }
  0xe6   :  { %v228_v23 = vrot.slane %v227_v14, 2  ;;  %v217_v9 = vmul.f32 %v209_v19, %v456_v17  ;;  %v233_v25 = vrot.slane %v232_v60, 4  ;;  %v251_v12 = vrot.slane %v250_v20, 1 }
  0xe7   :  { %v257_v26 = vadd.f32 %v256_v57, %v255_v11  ;;  %v213_v10 = vmul.f32 %v205_v22, %v458_v18  ;;  %v262_v35 = vadd.f32 %v261_v28, %v260_v21  ;;  %v223_v32 = vrot.slane %v222_v24, 1 }
  0xe8   :  { %v229_v27 = vadd.f32 %v228_v23, %v227_v14  ;;  %v234_v29 = vadd.f32 %v233_v25, %v232_v60  ;;  %v267_v33 = vsel %vm49_vm0, %v217_v9, 0.0  ;;  %v252_v42 = vadd.f32 %v251_v12, %v250_v20 }
  0xe9   :  { %v258_v30 = vrot.slane %v257_v26, 1  ;;  %v239_v15 = vsel %vm49_vm0, %v213_v10, 0.0  ;;  %v268_v31 = vrot.slane %v267_v33, 4  ;;  %v263_v39 = vrot.slane %v262_v35, 2 }
  0xea   :  { %v230_v34 = vrot.slane %v229_v27, 1  ;;  %v235_v36 = vrot.slane %v234_v29, 2  ;;  %v240_v17 = vrot.slane %v239_v15, 4  ;;  %v224_v49 = vadd.f32 %v223_v32, %v222_v24 }
  0xeb   :  { %v259_v37 = vadd.f32 %v258_v30, %v257_v26  ;;  %v269_v43 = vadd.f32 %v268_v31, %v267_v33  ;;  %v264_v45 = vadd.f32 %v263_v39, %v262_v35  ;;  %v281_v59 = vsel %vm49_vm0, %v252_v42, 0.0 }
  0xec   :  { %v231_v44 = vadd.f32 %v230_v34, %v229_v27  ;;  %v236_v18 = vadd.f32 %v235_v36, %v234_v29  ;;  %v241_v41 = vadd.f32 %v240_v17, %v239_v15  ;;  %v274_v61 = vsel %vm49_vm0, %v224_v49, 0.0 }
  0xed   :  { %v270_v47 = vrot.slane %v269_v43, 2  ;;  %v265_v52 = vrot.slane %v264_v45, 1  ;;  %v282_v54 = vsel %vm49_vm0, %v259_v37, 0.0 }
  0xee   :  { %v237_v50 = vrot.slane %v236_v18, 1  ;;  %v242_v51 = vrot.slane %v241_v41, 2  ;;  %v275_v56 = vsel %vm49_vm0, %v231_v44, 0.0  ;;  %v283_v2 = vadd.f32 %v282_v54, %v281_v59 }
  0xef   :  { %v271_v53 = vadd.f32 %v270_v47, %v269_v43  ;;  %v266_v40 = vadd.f32 %v265_v52, %v264_v45  ;;  %v276_v46 = vadd.f32 %v275_v56, %v274_v61 }
  0xf0   :  { %v238_v55 = vadd.f32 %v237_v50, %v236_v18  ;;  %v243_v38 = vadd.f32 %v242_v51, %v241_v41 }
  0xf1   :  { %v272_v58 = vrot.slane %v271_v53, 1  ;;  %v284_v1 = vsel %vm49_vm0, %v266_v40, 0.0 }
  0xf2   :  { %v244_v0 = vrot.slane %v243_v38, 1  ;;  %v277_v62 = vsel %vm49_vm0, %v238_v55, 0.0  ;;  %v285_v48 = vadd.f32 %v284_v1, %v283_v2 }
  0xf3   :  { %v273_v63 = vadd.f32 %v272_v58, %v271_v53  ;;  %v278_v4 = vadd.f32 %v277_v62, %v276_v46 }
  0xf4   :  { %v245_v3 = vadd.f32 %v244_v0, %v243_v38 }
  0xf5   :  { %v286_v7 = vsel %vm49_vm0, %v273_v63, 0.0 }
  0xf6   :  { %v279_v5 = vsel %vm49_vm0, %v245_v3, 0.0  ;;  %v287_v8 = vadd.f32 %v286_v7, %v285_v48 }
  0xf7   :  { %v280_v11 = vadd.f32 %v279_v5, %v278_v4 }
  0xf8   :  { %v290_v6 = vmul.f32 0.25, %v287_v8 }
  0xf9   :  { %v289_v13 = vmul.f32 0.25, %v280_v11 }
  0xfa   :  { %293 = vst.msk [vmem:[#allocation5 + $0x1] sm:$0x1] %vm291_vm1, %v290_v6 }
  0xfb   :  { %292 = vst.msk [vmem:[#allocation5] sm:$0x1] %vm291_vm1, %v289_v13 }
  0xfc   :  { %383 = shalt.err (!%p380_p12)
}
  0xfd   :  { %s384_s28 = scalar_lea.hbm %s544_s2, 32 }
  0xfe   :  { %p385_p13 = scmp.ne.s32.totalorder %s544_s2, %s384_s28  ;;  %p388_p0 = scmp.lt.u32.totalorder %s384_s28, %s544_s2 }
 0x100   :  { %p390_p1 = pnand %p388_p0, %p385_p13 }
 0x102   :  { %393 = shalt.err (!%p390_p1)
}
 0x103   :  { %s402_s5 = smov 16   ;;  %s403_s6 = smov 1  }
 0x104   :  { %305 = dma.vmem_to_hbm [thread:$0]  %s300_s1, 32, %s544_s2, [#allocation4], %s402_s5, %s402_s5, %s403_s6  }
 0x105   :  { %396 = dma.done.wait [#allocation4], 32  }
 0x106   :  { %397 = vsyncadd [#allocation4], 4294967264 }
 0x107   :  { %309 = vsyncpa [#allocation3], 1 }
 0x108   :  { %310 = vsyncpa [#allocation4], 1 }

</bundles_post_ra>
